<compile_context>
chip_gen: v6e
topology: v6e:2x2x1
jax: 0.10.0
libtpu: 0.0.40
codegen_flags: <defaults>
</compile_context>

<pallas_src>
import jax
import jax.numpy as jnp
from jax.experimental import pallas as pl
from jax.experimental.pallas import tpu as pltpu

_LANE = 128
_SUBLANE = 8


def _round_up(x, m):
    return ((x + m - 1) // m) * m


def _deep_mlp_kernel(x_ref, w1_ref, b1_ref, w2_ref, b2_ref, w3_ref, b3_ref, o_ref):
    # Layer 1: Linear + LeakyReLU(0.1).  Refs feed the MXU directly; f32 acc.
    h1 = jnp.dot(x_ref[...], w1_ref[...], preferred_element_type=jnp.float32)
    h1 = h1 + b1_ref[...]
    h1 = jnp.where(h1 >= 0, h1, 0.1 * h1)

    # Layer 2: Linear + LeakyReLU(0.1)
    h2 = jnp.dot(h1.astype(w2_ref.dtype), w2_ref[...],
                 preferred_element_type=jnp.float32)
    h2 = h2 + b2_ref[...]
    h2 = jnp.where(h2 >= 0, h2, 0.1 * h2)

    # Layer 3: Linear + numerically-stable sigmoid (exp + approx recip -> EUP).
    h3 = jnp.dot(h2.astype(w3_ref.dtype), w3_ref[...],
                 preferred_element_type=jnp.float32)
    h3 = h3 + b3_ref[...]
    e = jnp.exp(-jnp.abs(h3))                       # always <= 1, never inf
    num = jnp.where(h3 >= 0, 1.0, e)
    o_ref[...] = (num * pl.reciprocal(1.0 + e, approx=True)).astype(o_ref.dtype)


def deep_mlp(x, w1, b1, w2, b2, w3, b3, *, block_m=256):
    """x: (B, input_size); w_i: (in_i, out_i); b_i: (out_i,) or (1, out_i).

    block_m: batch tile (use 128 on v5e, 256 on v6e/v7x for large batches).
    """
    B, K = x.shape
    H1 = w1.shape[1]
    H2 = w2.shape[1]
    O = w3.shape[1]

    # Lane-pad every feature/output dim to a multiple of 128 (full MXU width,
    # unmasked output stores).  Padded weight rows/cols and bias lanes are 0,
    # so padded activations stay 0 through LeakyReLU and never contaminate
    # the real columns; the final padded columns are sliced off below.
    H1p = max(_LANE, _round_up(H1, _LANE))
    H2p = max(_LANE, _round_up(H2, _LANE))
    Op = max(_LANE, _round_up(O, _LANE))

    def pad2(a, rows, cols, dtype):
        a = jnp.asarray(a, dtype)
        return jnp.pad(a, ((0, rows - a.shape[0]), (0, cols - a.shape[1])))

    w1p = pad2(w1, K, H1p, w1.dtype)
    w2p = pad2(w2, H1p, H2p, w2.dtype)
    w3p = pad2(w3, H2p, Op, w3.dtype)
    b1p = pad2(jnp.reshape(b1, (1, -1)), 1, H1p, jnp.float32)
    b2p = pad2(jnp.reshape(b2, (1, -1)), 1, H2p, jnp.float32)
    b3p = pad2(jnp.reshape(b3, (1, -1)), 1, Op, jnp.float32)

    # Batch tiling: sublane-aligned tile, batch padded to a tile multiple.
    tm = min(block_m, _round_up(B, _SUBLANE))
    b_pad = _round_up(B, tm)
    xp = jnp.pad(x, ((0, b_pad - B), (0, 0)))
    grid = (b_pad // tm,)

    resident = lambda shape: pl.BlockSpec(shape, lambda i: (0, 0))

    out = pl.pallas_call(
        _deep_mlp_kernel,
        out_shape=jax.ShapeDtypeStruct((b_pad, Op), jnp.float32),
        grid=grid,
        in_specs=[
            pl.BlockSpec((tm, K), lambda i: (i, 0)),   # x: streamed per tile
            resident((K, H1p)), resident((1, H1p)),    # w1, b1: VMEM-resident
            resident((H1p, H2p)), resident((1, H2p)),  # w2, b2
            resident((H2p, Op)), resident((1, Op)),    # w3, b3
        ],
        out_specs=pl.BlockSpec((tm, Op), lambda i: (i, 0)),
        compiler_params=pltpu.CompilerParams(
            dimension_semantics=("parallel",)),
    )(xp, w1p, b1p, w2p, b2p, w3p, b3p)

    return out[:B, :O]


def init_params(key, input_size, hidden_size, output_size):
    """Deterministic init mimicking nn.Linear (uniform +-1/sqrt(fan_in)),
    stored transposed as (in, out)."""
    ks = jax.random.split(key, 6)

    def linear(kw, kb, fan_in, fan_out):
        bound = 1.0 / jnp.sqrt(fan_in)
        w = jax.random.uniform(kw, (fan_in, fan_out), jnp.float32, -bound, bound)
        b = jax.random.uniform(kb, (1, fan_out), jnp.float32, -bound, bound)
        return w, b

    w1, b1 = linear(ks[0], ks[1], input_size, hidden_size)
    w2, b2 = linear(ks[2], ks[3], hidden_size, hidden_size)
    w3, b3 = linear(ks[4], ks[5], hidden_size, output_size)
    return w1, b1, w2, b2, w3, b3


if __name__ == "__main__":
    key = jax.random.PRNGKey(0)
    k_x, k_p = jax.random.split(key)

    batch = 8
    input_size = 16
    hidden_size = 32
    output_size = 8

    x = jax.random.normal(k_x, (batch, input_size), jnp.float32)
    params = init_params(k_p, input_size, hidden_size, output_size)

    out = deep_mlp(x, *params)
    out = jax.block_until_ready(out)

    # Reference in plain JAX for sanity check.
    w1, b1, w2, b2, w3, b3 = params
    h = x @ w1 + b1
    h = jnp.where(h >= 0, h, 0.1 * h)
    h = h @ w2 + b2
    h = jnp.where(h >= 0, h, 0.1 * h)
    ref = jax.nn.sigmoid(h @ w3 + b3)

    assert out.shape == (batch, output_size)
    # Approx EUP reciprocal in the sigmoid -> allow ~1e-3 absolute tolerance.
    assert jnp.allclose(out, ref, atol=1e-3, rtol=1e-3)
    print("KERNEL_OK")
</pallas_src>

<mosaic_0001>
module attributes {stable_mosaic.version = 11 : i64} {
  func.func @_deep_mlp_kernel(%arg0: i32, %arg1: memref<8x16xf32, #tpu.memory_space<vmem>>, %arg2: memref<16x128xf32, #tpu.memory_space<vmem>>, %arg3: memref<1x128xf32, #tpu.memory_space<vmem>>, %arg4: memref<128x128xf32, #tpu.memory_space<vmem>>, %arg5: memref<1x128xf32, #tpu.memory_space<vmem>>, %arg6: memref<128x128xf32, #tpu.memory_space<vmem>>, %arg7: memref<1x128xf32, #tpu.memory_space<vmem>>, %arg8: memref<8x128xf32, #tpu.memory_space<vmem>>) attributes {dimension_semantics = [#tpu.dimension_semantics<parallel>], iteration_bounds = array<i64: 1>, scalar_prefetch = 0 : i64, scratch_operands = 0 : i64, tpu.core_type = #tpu.core_type<tc>, window_params = [{transform_indices = @transform_0, window_bounds = array<i64: 8, 16>}, {pipeline_mode = #tpu.pipeline_mode<synchronous>, transform_indices = @transform_1, window_bounds = array<i64: 16, 128>}, {pipeline_mode = #tpu.pipeline_mode<synchronous>, transform_indices = @transform_2, window_bounds = array<i64: 1, 128>}, {pipeline_mode = #tpu.pipeline_mode<synchronous>, transform_indices = @transform_3, window_bounds = array<i64: 128, 128>}, {pipeline_mode = #tpu.pipeline_mode<synchronous>, transform_indices = @transform_4, window_bounds = array<i64: 1, 128>}, {pipeline_mode = #tpu.pipeline_mode<synchronous>, transform_indices = @transform_5, window_bounds = array<i64: 128, 128>}, {pipeline_mode = #tpu.pipeline_mode<synchronous>, transform_indices = @transform_6, window_bounds = array<i64: 1, 128>}, {transform_indices = @transform_7, window_bounds = array<i64: 8, 128>}]} {
    %c0 = arith.constant 0 : index
    %c0_0 = arith.constant 0 : index
    %0 = vector.load %arg1[%c0, %c0_0] : memref<8x16xf32, #tpu.memory_space<vmem>>, vector<8x16xf32>
    %c0_1 = arith.constant 0 : index
    %c0_2 = arith.constant 0 : index
    %1 = vector.load %arg2[%c0_1, %c0_2] : memref<16x128xf32, #tpu.memory_space<vmem>>, vector<16x128xf32>
    %cst = arith.constant dense<0.000000e+00> : vector<8x128xf32>
    %2 = tpu.matmul %0, %1, %cst {dimension_numbers = #tpu.dot_dimension_numbers<[1], [0], [0], [1], [0, 0, 1, 1], [], []>} : vector<8x16xf32>, vector<16x128xf32>, vector<8x128xf32> -> vector<8x128xf32>
    %c0_3 = arith.constant 0 : index
    %c0_4 = arith.constant 0 : index
    %3 = vector.load %arg3[%c0_3, %c0_4] : memref<1x128xf32, #tpu.memory_space<vmem>>, vector<1x128xf32>
    %4 = vector.broadcast %3 : vector<1x128xf32> to vector<8x128xf32>
    %5 = arith.addf %2, %4 : vector<8x128xf32>
    %cst_5 = arith.constant 0.000000e+00 : f32
    %6 = vector.broadcast %cst_5 : f32 to vector<8x128xf32>
    %7 = arith.cmpf oge, %5, %6 : vector<8x128xf32>
    %cst_6 = arith.constant 1.000000e-01 : f32
    %8 = vector.broadcast %cst_6 : f32 to vector<8x128xf32>
    %9 = arith.mulf %8, %5 : vector<8x128xf32>
    %10 = arith.select %7, %5, %9 : vector<8x128xi1>, vector<8x128xf32>
    %c0_7 = arith.constant 0 : index
    %c0_8 = arith.constant 0 : index
    %11 = vector.load %arg4[%c0_7, %c0_8] : memref<128x128xf32, #tpu.memory_space<vmem>>, vector<128x128xf32>
    %cst_9 = arith.constant dense<0.000000e+00> : vector<8x128xf32>
    %12 = tpu.matmul %10, %11, %cst_9 {dimension_numbers = #tpu.dot_dimension_numbers<[1], [0], [0], [1], [0, 0, 1, 1], [], []>} : vector<8x128xf32>, vector<128x128xf32>, vector<8x128xf32> -> vector<8x128xf32>
    %c0_10 = arith.constant 0 : index
    %c0_11 = arith.constant 0 : index
    %13 = vector.load %arg5[%c0_10, %c0_11] : memref<1x128xf32, #tpu.memory_space<vmem>>, vector<1x128xf32>
    %14 = vector.broadcast %13 : vector<1x128xf32> to vector<8x128xf32>
    %15 = arith.addf %12, %14 : vector<8x128xf32>
    %cst_12 = arith.constant 0.000000e+00 : f32
    %16 = vector.broadcast %cst_12 : f32 to vector<8x128xf32>
    %17 = arith.cmpf oge, %15, %16 : vector<8x128xf32>
    %cst_13 = arith.constant 1.000000e-01 : f32
    %18 = vector.broadcast %cst_13 : f32 to vector<8x128xf32>
    %19 = arith.mulf %18, %15 : vector<8x128xf32>
    %20 = arith.select %17, %15, %19 : vector<8x128xi1>, vector<8x128xf32>
    %c0_14 = arith.constant 0 : index
    %c0_15 = arith.constant 0 : index
    %21 = vector.load %arg6[%c0_14, %c0_15] : memref<128x128xf32, #tpu.memory_space<vmem>>, vector<128x128xf32>
    %cst_16 = arith.constant dense<0.000000e+00> : vector<8x128xf32>
    %22 = tpu.matmul %20, %21, %cst_16 {dimension_numbers = #tpu.dot_dimension_numbers<[1], [0], [0], [1], [0, 0, 1, 1], [], []>} : vector<8x128xf32>, vector<128x128xf32>, vector<8x128xf32> -> vector<8x128xf32>
    %c0_17 = arith.constant 0 : index
    %c0_18 = arith.constant 0 : index
    %23 = vector.load %arg7[%c0_17, %c0_18] : memref<1x128xf32, #tpu.memory_space<vmem>>, vector<1x128xf32>
    %24 = vector.broadcast %23 : vector<1x128xf32> to vector<8x128xf32>
    %25 = arith.addf %22, %24 : vector<8x128xf32>
    %26 = math.absf %25 : vector<8x128xf32>
    %cst_19 = arith.constant 0.000000e+00 : f32
    %27 = vector.broadcast %cst_19 : f32 to vector<8x128xf32>
    %28 = arith.subf %27, %26 : vector<8x128xf32>
    %29 = math.exp %28 : vector<8x128xf32>
    %cst_20 = arith.constant 0.000000e+00 : f32
    %30 = vector.broadcast %cst_20 : f32 to vector<8x128xf32>
    %31 = arith.cmpf oge, %25, %30 : vector<8x128xf32>
    %cst_21 = arith.constant 1.000000e+00 : f32
    %32 = vector.broadcast %cst_21 : f32 to vector<8x128xf32>
    %33 = arith.select %31, %32, %29 : vector<8x128xi1>, vector<8x128xf32>
    %cst_22 = arith.constant 1.000000e+00 : f32
    %34 = vector.broadcast %cst_22 : f32 to vector<8x128xf32>
    %35 = arith.addf %34, %29 : vector<8x128xf32>
    %36 = tpu.reciprocal %35 {approx = true} : vector<8x128xf32> -> vector<8x128xf32>
    %37 = arith.mulf %33, %36 : vector<8x128xf32>
    %c0_23 = arith.constant 0 : index
    %c0_24 = arith.constant 0 : index
    %38 = vector.load %arg8[%c0_23, %c0_24] : memref<8x128xf32, #tpu.memory_space<vmem>>, vector<8x128xf32>
    tpu.vector_store %arg8[%c0_23, %c0_24], %37 {strides = array<i32>} : memref<8x128xf32, #tpu.memory_space<vmem>>, vector<8x128xf32>,
    return
  }
  func.func @transform_0(%arg0: i32) -> (i32, i32) {
    %c0_i32 = arith.constant 0 : i32
    %c0_i32_0 = arith.constant 0 : i32
    return %arg0, %c0_i32 : i32, i32
  }
  func.func @transform_1(%arg0: i32) -> (i32, i32) {
    %c0_i32 = arith.constant 0 : i32
    %c0_i32_0 = arith.constant 0 : i32
    %c0_i32_1 = arith.constant 0 : i32
    return %c0_i32, %c0_i32_0 : i32, i32
  }
  func.func @transform_2(%arg0: i32) -> (i32, i32) {
    %c0_i32 = arith.constant 0 : i32
    %c0_i32_0 = arith.constant 0 : i32
    %c0_i32_1 = arith.constant 0 : i32
    return %c0_i32, %c0_i32_0 : i32, i32
  }
  func.func @transform_3(%arg0: i32) -> (i32, i32) {
    %c0_i32 = arith.constant 0 : i32
    %c0_i32_0 = arith.constant 0 : i32
    %c0_i32_1 = arith.constant 0 : i32
    return %c0_i32, %c0_i32_0 : i32, i32
  }
  func.func @transform_4(%arg0: i32) -> (i32, i32) {
    %c0_i32 = arith.constant 0 : i32
    %c0_i32_0 = arith.constant 0 : i32
    %c0_i32_1 = arith.constant 0 : i32
    return %c0_i32, %c0_i32_0 : i32, i32
  }
  func.func @transform_5(%arg0: i32) -> (i32, i32) {
    %c0_i32 = arith.constant 0 : i32
    %c0_i32_0 = arith.constant 0 : i32
    %c0_i32_1 = arith.constant 0 : i32
    return %c0_i32, %c0_i32_0 : i32, i32
  }
  func.func @transform_6(%arg0: i32) -> (i32, i32) {
    %c0_i32 = arith.constant 0 : i32
    %c0_i32_0 = arith.constant 0 : i32
    %c0_i32_1 = arith.constant 0 : i32
    return %c0_i32, %c0_i32_0 : i32, i32
  }
  func.func @transform_7(%arg0: i32) -> (i32, i32) {
    %c0_i32 = arith.constant 0 : i32
    %c0_i32_0 = arith.constant 0 : i32
    return %arg0, %c0_i32 : i32, i32
  }
}

</mosaic_0001>

<bundles_post_ra>
// kernel: tpu_custom_call.1
= control target key start
LH: loop header
LB: loop body
LE: loop exit
PB: predicated region body
PF: predicated region fallthrough
CT: control target
= control target key end

     0   :  { %12 = vsyncpa [#allocation3], 0  ;;  %s744_s0 = inlined_call_operand.hbm [shape: f32[8,16], index: 0, kind: input, shape index: {}]   ;;  %s745_s1 = inlined_call_operand.hbm [shape: f32[16,128], index: 1, kind: input, shape index: {}]   ;;  %s746_s2 = inlined_call_operand.vmem [shape: f32[1,128], index: 2, kind: input, shape index: {}]   ;;  %s747_s3 = inlined_call_operand.hbm [shape: f32[128,128], index: 3, kind: input, shape index: {}]   ;;  %s748_s4 = inlined_call_operand.vmem [shape: f32[1,128], index: 4, kind: input, shape index: {}]   ;;  %s749_s5 = inlined_call_operand.hbm [shape: f32[128,128], index: 5, kind: input, shape index: {}]   ;;  %s750_s6 = inlined_call_operand.vmem [shape: f32[1,128], index: 6, kind: input, shape index: {}]   ;;  %s751_s7 = inlined_call_operand.hbm [shape: f32[8,128], index: 7, kind: output, shape index: {}]  }
   0x1   :  { %13 = vsyncpa [#allocation6], 0 }
   0x2   :  { %14 = vsyncpa [#allocation9], 0 }
   0x3   :  { %15 = vsyncpa [#allocation4], 0  ;;  %s622_s24 = smov [#allocation5]  }
   0x4   :  { %s31_s25 = sshll.u32 %s622_s24, 4  ;;  %s32_s25 = int_to_ptr.vmem [resolvable:$true] %s31_s25 }
   0x5   :  { %s522_s26 = scalar_lea.vmem %s32_s25, 256  ;;  %p527_p1 = scmp.lt.s32.totalorder %s32_s25, %s32_s25 }
   0x6   :  { %p523_p0 = scmp.ne.s32.totalorder %s32_s25, %s522_s26  ;;  %p528_p2 = scmp.lt.s32.totalorder %s522_s26, %s522_s26 }
   0x8   :  { %p529_p3 = por %p528_p2, %p527_p1 }
   0xa   :  { %p530_p4 = pnand %p529_p3, %p523_p0 }
   0xc   :  { %533 = shalt.err (!%p530_p4)
}
   0xd   :  { %s623_s27 = smov 128   ;;  %s624_s28 = smov 8  }
   0xe   :  { %37 = dma.hbm_to_vmem [thread:$0]  %s745_s1, 256, %s32_s25, [#allocation6], %s623_s27, %s623_s27, %s624_s28  }
   0xf   :  { %s625_s8 = smov [#allocation2]   ;;  %s626_s10 = smov [#allocation7]  }
  0x10   :  { %s22_s9 = sshll.u32 %s625_s8, 4  ;;  %s45_s11 = sshll.u32 %s626_s10, 4  ;;  %s23_s9 = int_to_ptr.vmem [resolvable:$true] %s22_s9  ;;  %s46_s11 = int_to_ptr.vmem [resolvable:$true] %s45_s11 }
  0x11   :  { %s542_s12 = scalar_lea.vmem %s23_s9, 128  ;;  %p547_p6 = scmp.lt.s32.totalorder %s23_s9, %s23_s9 }
  0x12   :  { %p543_p5 = scmp.ne.s32.totalorder %s23_s9, %s542_s12  ;;  %p548_p7 = scmp.lt.s32.totalorder %s542_s12, %s542_s12 }
  0x14   :  { %p549_p8 = por %p548_p7, %p547_p6 }
  0x16   :  { %p550_p9 = pnand %p549_p8, %p543_p5 }
  0x18   :  { %553 = shalt.err (!%p550_p9)
}
  0x19   :  { %25 = dma.hbm_to_vmem [thread:$0]  %s744_s0, 128, %s23_s9, [#allocation3]  }
  0x1a   :  { %s562_s15 = scalar_lea.vmem %s46_s11, 2048  ;;  %p567_p11 = scmp.lt.s32.totalorder %s46_s11, %s46_s11 }
  0x1b   :  { %p563_p10 = scmp.ne.s32.totalorder %s46_s11, %s562_s15  ;;  %p568_p12 = scmp.lt.s32.totalorder %s562_s15, %s562_s15 }
  0x1d   :  { %p569_p13 = por %p568_p12, %p567_p11 }
  0x1f   :  { %p570_p0 = pnand %p569_p13, %p563_p10 }
  0x21   :  { %573 = shalt.err (!%p570_p0)
}
  0x22   :  { %51 = dma.hbm_to_vmem [thread:$0]  %s747_s3, 2048, %s46_s11, [#allocation6], %s623_s27, %s623_s27, %s624_s28  }
  0x23   :  { %s627_s17 = smov [#allocation8]  }
  0x24   :  { %s59_s18 = sshll.u32 %s627_s17, 4  ;;  %s60_s18 = int_to_ptr.vmem [resolvable:$true] %s59_s18 }
  0x25   :  { %s582_s19 = scalar_lea.vmem %s60_s18, 2048  ;;  %p587_p2 = scmp.lt.s32.totalorder %s60_s18, %s60_s18 }
  0x26   :  { %p583_p1 = scmp.ne.s32.totalorder %s60_s18, %s582_s19  ;;  %p588_p3 = scmp.lt.s32.totalorder %s582_s19, %s582_s19 }
  0x28   :  { %p589_p4 = por %p588_p3, %p587_p2 }
  0x2a   :  { %p590_p5 = pnand %p589_p4, %p583_p1 }
  0x2c   :  { %593 = shalt.err (!%p590_p5)
}
  0x2d   :  { %65 = dma.hbm_to_vmem [thread:$0]  %s749_s5, 2048, %s60_s18, [#allocation9], %s623_s27, %s623_s27, %s624_s28  }
  0x2e   :  { %614 = dma.done.wait [#allocation3], 128  }
  0x2f   :  { %615 = vsyncadd [#allocation3], 4294967168 }
  0x30   :  { %616 = dma.done.wait [#allocation6], 2304  }
  0x31   :  { %617 = vsyncadd [#allocation6], 4294964992 }
  0x32   :  { %618 = dma.done.wait [#allocation9], 2048  }
  0x33   :  { %619 = vsyncadd [#allocation9], 4294965248  ;;  %v628_v0 = vmov 0.0   ;;  %vm629_vm0 = vmmov 0   ;;  %v82_v1 = vld [vmem:[#allocation5 + $0x8] sm:$0xff]  ;;  %v81_v2 = vld [vmem:[#allocation5] sm:$0xff] }
  0x34   :  { %424 = vmatprep.subr.mxu0 %v628_v0  ;;  %428 = vmatprep.mubr.msk.f32.mxu0 %vm629_vm0, %v628_v0  ;;  %v80_v3 = vld [vmem:[#allocation2] sm:$0xff]  ;;  %vm90_vm1 = vcmask 130048   ;;  %v182_v4 = vld [vmem:[#allocation7 + $0x78] sm:$0xff]  ;;  %v181_v5 = vld [vmem:[#allocation7 + $0x70] sm:$0xff] }
  0x35   :  { %431 = vmatprep.subr.mxu1 %v628_v0  ;;  %463 = vmatprep.mubr.msk.f32.mxu1 %vm629_vm0, %v628_v0  ;;  %v180_v6 = vld [vmem:[#allocation7 + $0x68] sm:$0xff]  ;;  %v179_v7 = vld [vmem:[#allocation7 + $0x60] sm:$0xff]  ;;  %v178_v8 = vld [vmem:[#allocation7 + $0x58] sm:$0xff] }
  0x36   :  { %425 = vmatpush3.msra.mxu0 %v82_v1  ;;  %432 = vmatpush3.msra.mxu1 %v182_v4  ;;  %v177_v9 = vld [vmem:[#allocation7 + $0x50] sm:$0xff]  ;;  %v176_v10 = vld [vmem:[#allocation7 + $0x48] sm:$0xff]  ;;  %v175_v11 = vld [vmem:[#allocation7 + $0x40] sm:$0xff] }
  0x37   :  { %426 = vmatprep.subr.mxu0 %v628_v0  ;;  %433 = vmatprep.subr.mxu1 %v628_v0  ;;  %v174_v12 = vld [vmem:[#allocation7 + $0x38] sm:$0xff]  ;;  %v173_v13 = vld [vmem:[#allocation7 + $0x30] sm:$0xff]  ;;  %v172_v14 = vld [vmem:[#allocation7 + $0x28] sm:$0xff] }
  0x38   :  { %427 = vmatpush3.msra.mxu0 %v81_v2  ;;  %434 = vmatpush3.msra.mxu1 %v181_v5  ;;  %v171_v15 = vld [vmem:[#allocation7 + $0x20] sm:$0xff]  ;;  %v170_v16 = vld [vmem:[#allocation7 + $0x18] sm:$0xff]  ;;  %v169_v17 = vld [vmem:[#allocation7 + $0x10] sm:$0xff] }
  0x39   :  { %429 = vmatmul.mubr.msk.f32.vlgmr.msra.gmra.mxu0 %vm90_vm1, %v80_v3  ;;  %435 = vmatprep.subr.mxu1 %v628_v0  ;;  %v168_v18 = vld [vmem:[#allocation7 + $0x8] sm:$0xff]  ;;  %v167_v19 = vld [vmem:[#allocation7] sm:$0xff]  ;;  %v278_v20 = vld [vmem:[#allocation8 + $0x78] sm:$0xff] }
  0x3a   :  { %466 = vmatprep.subr.mxu0 %v628_v0  ;;  %436 = vmatpush3.msra.mxu1 %v180_v6  ;;  %v277_v21 = vld [vmem:[#allocation8 + $0x70] sm:$0xff]  ;;  %v276_v22 = vld [vmem:[#allocation8 + $0x68] sm:$0xff]  ;;  %v275_v23 = vld [vmem:[#allocation8 + $0x60] sm:$0xff] }
  0x3b   :  { %498 = vmatprep.mubr.msk.f32.mxu0 %vm629_vm0, %v628_v0  ;;  %437 = vmatprep.subr.mxu1 %v628_v0  ;;  %v274_v24 = vld [vmem:[#allocation8 + $0x58] sm:$0xff]  ;;  %v273_v25 = vld [vmem:[#allocation8 + $0x50] sm:$0xff]  ;;  %v272_v26 = vld [vmem:[#allocation8 + $0x48] sm:$0xff] }
  0x3c   :  { %438 = vmatpush3.msra.mxu1 %v179_v7  ;;  %467 = vmatpush3.msra.mxu0 %v278_v20  ;;  %v271_v27 = vld [vmem:[#allocation8 + $0x40] sm:$0xff]  ;;  %v270_v28 = vld [vmem:[#allocation8 + $0x38] sm:$0xff]  ;;  %v269_v29 = vld [vmem:[#allocation8 + $0x30] sm:$0xff] }
  0x3d   :  { %439 = vmatprep.subr.mxu1 %v628_v0  ;;  %468 = vmatprep.subr.mxu0 %v628_v0  ;;  %v268_v30 = vld [vmem:[#allocation8 + $0x28] sm:$0xff]  ;;  %v267_v31 = vld [vmem:[#allocation8 + $0x20] sm:$0xff]  ;;  %v266_v32 = vld [vmem:[#allocation8 + $0x18] sm:$0xff] }
  0x3e   :  { %440 = vmatpush3.msra.mxu1 %v178_v8  ;;  %469 = vmatpush3.msra.mxu0 %v277_v21  ;;  %v383_v33 = vld [vmem:[%s746_s2] ss:$0 sm:$0xff]  ;;  %v265_v39 = vld [vmem:[#allocation8 + $0x10] sm:$0xff]  ;;  %v263_v41 = vld [vmem:[#allocation8] sm:$0xff] }
  0x3f   :  { %441 = vmatprep.subr.mxu1 %v628_v0  ;;  %470 = vmatprep.subr.mxu0 %v628_v0  ;;  %v264_v40 = vld [vmem:[#allocation8 + $0x8] sm:$0xff] }
  0x40   :  { %442 = vmatpush3.msra.mxu1 %v177_v9  ;;  %471 = vmatpush3.msra.mxu0 %v276_v22  ;;  %v385_v42 = vld [vmem:[%s748_s4] ss:$0 sm:$0xff]  ;;  %s630_s4 = smov [#allocation10]  }
  0x41   :  { %443 = vmatprep.subr.mxu1 %v628_v0  ;;  %472 = vmatprep.subr.mxu0 %v628_v0  ;;  %v386_v48 = vld [vmem:[%s750_s6] ss:$0 sm:$0xff]  ;;  %s372_s24 = sshll.u32 %s630_s4, 4  ;;  %s373_s24 = int_to_ptr.vmem [resolvable:$true] %s372_s24 }
  0x42   :  { %444 = vmatpush3.msra.mxu1 %v176_v10  ;;  %473 = vmatpush3.msra.mxu0 %v275_v23  ;;  %s594_s25 = scalar_lea.vmem %s373_s24, 128  ;;  %p599_p7 = scmp.lt.s32.totalorder %s373_s24, %s373_s24 }
  0x43   :  { %445 = vmatprep.subr.mxu1 %v628_v0  ;;  %474 = vmatprep.subr.mxu0 %v628_v0  ;;  %p595_p6 = scmp.ne.s32.totalorder %s373_s24, %s594_s25  ;;  %p600_p8 = scmp.lt.s32.totalorder %s594_s25, %s594_s25 }
  0x44   :  { %446 = vmatpush3.msra.mxu1 %v175_v11  ;;  %475 = vmatpush3.msra.mxu0 %v274_v24 }
  0x45   :  { %447 = vmatprep.subr.mxu1 %v628_v0  ;;  %476 = vmatprep.subr.mxu0 %v628_v0  ;;  %p601_p9 = por %p600_p8, %p599_p7 }
  0x46   :  { %448 = vmatpush3.msra.mxu1 %v174_v12  ;;  %477 = vmatpush3.msra.mxu0 %v273_v25 }
  0x47   :  { %449 = vmatprep.subr.mxu1 %v628_v0  ;;  %478 = vmatprep.subr.mxu0 %v628_v0  ;;  %p602_p10 = pnand %p601_p9, %p595_p6 }
  0x48   :  { %450 = vmatpush3.msra.mxu1 %v173_v13  ;;  %479 = vmatpush3.msra.mxu0 %v272_v26 }
  0x49   :  { %451 = vmatprep.subr.mxu1 %v628_v0  ;;  %480 = vmatprep.subr.mxu0 %v628_v0 }
  0x4a   :  { %452 = vmatpush3.msra.mxu1 %v172_v14  ;;  %481 = vmatpush3.msra.mxu0 %v271_v27 }
  0x4b   :  { %453 = vmatprep.subr.mxu1 %v628_v0  ;;  %482 = vmatprep.subr.mxu0 %v628_v0 }
  0x4c   :  { %454 = vmatpush3.msra.mxu1 %v171_v15  ;;  %483 = vmatpush3.msra.mxu0 %v270_v28 }
  0x4d   :  { %455 = vmatprep.subr.mxu1 %v628_v0  ;;  %484 = vmatprep.subr.mxu0 %v628_v0 }
  0x4e   :  { %456 = vmatpush3.msra.mxu1 %v170_v16  ;;  %485 = vmatpush3.msra.mxu0 %v269_v29 }
  0x4f   :  { %457 = vmatprep.subr.mxu1 %v628_v0  ;;  %486 = vmatprep.subr.mxu0 %v628_v0 }
  0x50   :  { %458 = vmatpush3.msra.mxu1 %v169_v17  ;;  %487 = vmatpush3.msra.mxu0 %v268_v30 }
  0x51   :  { %459 = vmatprep.subr.mxu1 %v628_v0  ;;  %488 = vmatprep.subr.mxu0 %v628_v0 }
  0x52   :  { %460 = vmatpush3.msra.mxu1 %v168_v18  ;;  %489 = vmatpush3.msra.mxu0 %v267_v31 }
  0x53   :  { %461 = vmatprep.subr.mxu1 %v628_v0  ;;  %490 = vmatprep.subr.mxu0 %v628_v0 }
  0x54   :  { %462 = vmatpush3.msra.mxu1 %v167_v19  ;;  %491 = vmatpush3.msra.mxu0 %v266_v32 }
  0x55   :  { %492 = vmatprep.subr.mxu0 %v628_v0 }
  0x56   :  { %493 = vmatpush3.msra.mxu0 %v265_v39 }
  0x57   :  { %494 = vmatprep.subr.mxu0 %v628_v0 }
  0x58   :  { %495 = vmatpush3.msra.mxu0 %v264_v40 }
  0x59   :  { %496 = vmatprep.subr.mxu0 %v628_v0 }
  0x5a   :  { %497 = vmatpush3.msra.mxu0 %v263_v41 }
  0xf9   :  { %v160_v34 = vpop.f32.mrf.mxu0 }
  0xfa   :  { %v161_v35 = vadd.f32 %v383_v33, %v160_v34 }
  0xfb   :  { %v430_v36 = vpop.f32.mrf.mxu0 }
  0xfc   :  { %v165_v37 = vmul.f32 0.1, %v161_v35  ;;  %vm164_vm2 = vcmp.ge.f32.partialorder %v161_v35, 0.0 }
  0xfe   :  { %v166_v38 = vsel %vm164_vm2, %v161_v35, %v165_v37 }
  0xff   :  { %464 = vmatmul.mubr.f32.vlgmr.msra.gmra.mxu1 %v166_v38 }
 0x1bf   :  { %v256_v43 = vpop.f32.mrf.mxu1 }
 0x1c0   :  { %v257_v44 = vadd.f32 %v385_v42, %v256_v43 }
 0x1c1   :  { %v465_v45 = vpop.f32.mrf.mxu1 }
 0x1c2   :  { %vm260_vm3 = vcmp.ge.f32.partialorder %v257_v44, 0.0  ;;  %v261_v46 = vmul.f32 0.1, %v257_v44 }
 0x1c4   :  { %v262_v47 = vsel %vm260_vm3, %v257_v44, %v261_v46 }
 0x1c5   :  { %499 = vmatmul.mubr.f32.vlgmr.msra.gmra.mxu0 %v262_v47 }
 0x285   :  { %v352_v49 = vpop.f32.mrf.mxu0 }
 0x286   :  { %v353_v50 = vadd.f32 %v386_v48, %v352_v49 }
 0x287   :  { %v500_v51 = vpop.f32.mrf.mxu0 }
 0x288   :  { %v356_v52 = vand.u32 2147483647, %v353_v50  ;;  %vm360_vm4 = vcmp.ge.f32.partialorder %v353_v50, 0.0 }
 0x28a   :  { %v357_v53 = vsub.f32 0.0, %v356_v52 }
 0x28c   :  { %v358_v54 = vmul.f32 1.442695, %v357_v53 }
 0x28e   :  { %510 = vpow2.f32 %v358_v54 }
 0x29b   :  { %v511_v55 = vpop.eup %510 }
 0x29c   :  { %v362_v56 = vadd.f32 1.0, %v511_v55  ;;  %v361_v58 = vsel %vm360_vm4, 1.0, %v511_v55 }
 0x29e   :  { %512 = vrcp.f32 %v362_v56 }
 0x2ab   :  { %v513_v57 = vpop.eup %512 }
 0x2ac   :  { %v364_v59 = vmul.f32 %v513_v57, %v361_v58 }
 0x2ae   :  { %365 = vst [vmem:[#allocation10] sm:$0xff] %v364_v59 }
 0x2af   :  { %605 = shalt.err (!%p602_p10)
}
 0x2b0   :  { %375 = dma.vmem_to_hbm [thread:$0]  %s373_s24, 128, %s751_s7, [#allocation4]  }
 0x2b1   :  { %620 = dma.done.wait [#allocation4], 128  }
 0x2b2   :  { %621 = vsyncadd [#allocation4], 4294967168 }
 0x2b3   :  { %379 = vsyncpa [#allocation3], 1 }
 0x2b4   :  { %380 = vsyncpa [#allocation6], 1 }
 0x2b5   :  { %381 = vsyncpa [#allocation9], 1 }
 0x2b6   :  { %382 = vsyncpa [#allocation4], 1 }

</bundles_post_ra>
